<compile_context>
chip_gen: v6e
topology: v6e:2x2x1
jax: 0.10.0
libtpu: 0.0.40
codegen_flags: <defaults>
</compile_context>

<pallas_src>
import jax
import jax.numpy as jnp
from jax.experimental import pallas as pl
from jax.experimental.pallas import tpu as pltpu

_EPS = 1e-6  # matches L1_Sobel_Loss2.eps


def _shift_w(a, s):
    """b[..., j] = a[..., j + s] with zero fill (s in {-1, +1}); lane shift."""
    zero = jnp.zeros_like(a[..., :1])
    if s == 1:
        return jnp.concatenate([a[..., 1:], zero], axis=-1)
    return jnp.concatenate([zero, a[..., :-1]], axis=-1)


def _shift_h(a, s):
    """b[..., i, :] = a[..., i + s, :] with zero fill (s in {-1, +1}); sublane shift."""
    zero = jnp.zeros_like(a[..., :1, :])
    if s == 1:
        return jnp.concatenate([a[..., 1:, :], zero], axis=-2)
    return jnp.concatenate([zero, a[..., :-1, :]], axis=-2)


def _sobel_l1_kernel(eo_ref, tg_ref, out_ref):
    # Blocks are (Bt, H, W) in the inputs' native dtype; widen in-register.
    x = tg_ref[...].astype(jnp.float32)
    eo = eo_ref[...].astype(jnp.float32)

    # Separable 3x3 Sobel cross-correlation (PyTorch conv2d semantics, pad=1):
    #   kx = [1,2,1]^T (x) [1,0,-1]   ,   ky = [1,0,-1]^T (x) [1,2,1]
    xl = _shift_w(x, -1)              # x[..., j-1]
    xr = _shift_w(x, 1)               # x[..., j+1]
    hx = xl - xr
    hy = xl + 2.0 * x + xr
    gx = _shift_h(hx, -1) + 2.0 * hx + _shift_h(hx, 1)
    gy = _shift_h(hy, -1) - _shift_h(hy, 1)

    edge_y = jnp.abs(gx) + jnp.abs(gy)
    diff = eo - edge_y
    err = jnp.sqrt(diff * diff + jnp.float32(_EPS))

    # Per-step partial sum written into element (0,0) of an aligned (8,128)
    # output tile (full unmasked vector store; partials are summed outside).
    partial = jnp.sum(err)
    ri = jax.lax.broadcasted_iota(jnp.int32, (1, 8, 128), 1)
    ci = jax.lax.broadcasted_iota(jnp.int32, (1, 8, 128), 2)
    out_ref[...] = jnp.where((ri == 0) & (ci == 0), partial, 0.0)


def l1_sobel_loss2(edge_outputs, image_target, *, block_budget_bytes=24 << 20):
    """Fused L1_Sobel_Loss2.forward(edge_outputs, image_target) -> scalar loss."""
    assert edge_outputs.shape == image_target.shape
    n, c, h, w = image_target.shape
    # The PyTorch module uses Conv2d(1, 1, ...) so c == 1; the (N*C, H, W)
    # view applies Sobel per channel, identical when c == 1.
    bsz = n * c
    eo = edge_outputs.reshape(bsz, h, w)
    tg = image_target.reshape(bsz, h, w)

    # Pick how many images per grid step: 2 inputs x 2 pipeline buffers in the
    # native dtype plus ~6 live f32 temporaries per image, within the budget.
    in_bytes = int(eo.dtype.itemsize)
    per_img_bytes = h * w * (4 * in_bytes + 6 * 4)
    bt_max = max(1, block_budget_bytes // per_img_bytes)
    bt = 1
    for d in range(1, bsz + 1):
        if bsz % d == 0 and d <= bt_max:
            bt = d  # largest divisor of bsz within the VMEM budget
    num_blocks = bsz // bt

    img_spec = pl.BlockSpec((bt, h, w), lambda i: (i, 0, 0))

    partials = pl.pallas_call(
        _sobel_l1_kernel,
        out_shape=jax.ShapeDtypeStruct((num_blocks, 8, 128), jnp.float32),
        grid_spec=pltpu.PrefetchScalarGridSpec(
            num_scalar_prefetch=0,
            grid=(num_blocks,),
            in_specs=[img_spec, img_spec],
            out_specs=pl.BlockSpec((1, 8, 128), lambda i: (i, 0, 0)),
        ),
        compiler_params=pltpu.CompilerParams(
            # Each step writes its own output block -> fully parallel grid
            # (shards across both TensorCores on v7x, harmless on v5e/v6e).
            dimension_semantics=("parallel",),
            # Raise the scoped VMEM limit so the chosen block size fits on all
            # generations (v5e defaults to 16 MiB); stays within v7x's 64 MiB.
            vmem_limit_bytes=48 << 20,
        ),
    )(eo, tg)
    return jnp.sum(partials)


def _reference_loss(edge_outputs, image_target, eps=_EPS):
    """Pure-JAX reference identical to the PyTorch module."""
    x = image_target.astype(jnp.float32)
    _, _, h, w = x.shape
    xp = jnp.pad(x, ((0, 0), (0, 0), (1, 1), (1, 1)))
    kx = jnp.array([[1., 0., -1.], [2., 0., -2.], [1., 0., -1.]], jnp.float32)
    ky = jnp.array([[1., 2., 1.], [0., 0., 0.], [-1., -2., -1.]], jnp.float32)

    def corr(k):
        out = jnp.zeros_like(x)
        for dy in range(3):
            for dx in range(3):
                out = out + k[dy, dx] * xp[:, :, dy:dy + h, dx:dx + w]
        return out

    edge = jnp.abs(corr(kx)) + jnp.abs(corr(ky))
    diff = edge_outputs.astype(jnp.float32) - edge
    return jnp.sum(jnp.sqrt(diff * diff + eps))


if __name__ == "__main__":
    key = jax.random.PRNGKey(0)
    k1, k2 = jax.random.split(key)
    # Sobel2 uses Conv2d(1, 1, ...): channel dim must be 1.
    edge_outputs = jax.random.normal(k1, (2, 1, 16, 16), dtype=jnp.float32)
    image_target = jax.random.normal(k2, (2, 1, 16, 16), dtype=jnp.float32)

    loss = l1_sobel_loss2(edge_outputs, image_target)
    jax.block_until_ready(loss)

    ref = _reference_loss(edge_outputs, image_target)
    assert jnp.allclose(loss, ref, rtol=1e-4, atol=1e-3), (loss, ref)
    print("KERNEL_OK")
</pallas_src>

<mosaic_0001>
module attributes {stable_mosaic.version = 11 : i64} {
  func.func @_sobel_l1_kernel(%arg0: i32, %arg1: memref<2x16x16xf32, #tpu.memory_space<vmem>>, %arg2: memref<2x16x16xf32, #tpu.memory_space<vmem>>, %arg3: memref<1x8x128xf32, #tpu.memory_space<vmem>>) attributes {dimension_semantics = [#tpu.dimension_semantics<parallel>], iteration_bounds = array<i64: 1>, scalar_prefetch = 0 : i64, scratch_operands = 0 : i64, tpu.core_type = #tpu.core_type<tc>, window_params = [{transform_indices = @transform_0, window_bounds = array<i64: 2, 16, 16>}, {transform_indices = @transform_1, window_bounds = array<i64: 2, 16, 16>}, {transform_indices = @transform_2, window_bounds = array<i64: 1, 8, 128>}]} {
    %c0 = arith.constant 0 : index
    %c0_0 = arith.constant 0 : index
    %c0_1 = arith.constant 0 : index
    %0 = vector.load %arg2[%c0, %c0_0, %c0_1] : memref<2x16x16xf32, #tpu.memory_space<vmem>>, vector<2x16x16xf32>
    %c0_2 = arith.constant 0 : index
    %c0_3 = arith.constant 0 : index
    %c0_4 = arith.constant 0 : index
    %1 = vector.load %arg1[%c0_2, %c0_3, %c0_4] : memref<2x16x16xf32, #tpu.memory_space<vmem>>, vector<2x16x16xf32>
    %cst = arith.constant 0.000000e+00 : f32
    %2 = vector.broadcast %cst : f32 to vector<2x16x1xf32>
    %3 = vector.extract_strided_slice %0 {offsets = [0, 0, 0], sizes = [2, 16, 15], strides = [1, 1, 1]} : vector<2x16x16xf32> to vector<2x16x15xf32>
    %4 = tpu.concatenate %2, %3 in 2 : vector<2x16x1xf32>, vector<2x16x15xf32> -> vector<2x16x16xf32>
    %cst_5 = arith.constant 0.000000e+00 : f32
    %5 = vector.broadcast %cst_5 : f32 to vector<2x16x1xf32>
    %6 = vector.extract_strided_slice %0 {offsets = [0, 0, 1], sizes = [2, 16, 15], strides = [1, 1, 1]} : vector<2x16x16xf32> to vector<2x16x15xf32>
    %7 = tpu.concatenate %6, %5 in 2 : vector<2x16x15xf32>, vector<2x16x1xf32> -> vector<2x16x16xf32>
    %8 = arith.subf %4, %7 : vector<2x16x16xf32>
    %cst_6 = arith.constant 2.000000e+00 : f32
    %9 = vector.broadcast %cst_6 : f32 to vector<2x16x16xf32>
    %10 = arith.mulf %9, %0 : vector<2x16x16xf32>
    %11 = arith.addf %4, %10 : vector<2x16x16xf32>
    %12 = arith.addf %11, %7 : vector<2x16x16xf32>
    %cst_7 = arith.constant 0.000000e+00 : f32
    %13 = vector.broadcast %cst_7 : f32 to vector<2x1x16xf32>
    %14 = vector.extract_strided_slice %8 {offsets = [0, 0, 0], sizes = [2, 15, 16], strides = [1, 1, 1]} : vector<2x16x16xf32> to vector<2x15x16xf32>
    %15 = tpu.concatenate %13, %14 in 1 : vector<2x1x16xf32>, vector<2x15x16xf32> -> vector<2x16x16xf32>
    %cst_8 = arith.constant 2.000000e+00 : f32
    %16 = vector.broadcast %cst_8 : f32 to vector<2x16x16xf32>
    %17 = arith.mulf %16, %8 : vector<2x16x16xf32>
    %18 = arith.addf %15, %17 : vector<2x16x16xf32>
    %cst_9 = arith.constant 0.000000e+00 : f32
    %19 = vector.broadcast %cst_9 : f32 to vector<2x1x16xf32>
    %20 = vector.extract_strided_slice %8 {offsets = [0, 1, 0], sizes = [2, 15, 16], strides = [1, 1, 1]} : vector<2x16x16xf32> to vector<2x15x16xf32>
    %21 = tpu.concatenate %20, %19 in 1 : vector<2x15x16xf32>, vector<2x1x16xf32> -> vector<2x16x16xf32>
    %22 = arith.addf %18, %21 : vector<2x16x16xf32>
    %cst_10 = arith.constant 0.000000e+00 : f32
    %23 = vector.broadcast %cst_10 : f32 to vector<2x1x16xf32>
    %24 = vector.extract_strided_slice %12 {offsets = [0, 0, 0], sizes = [2, 15, 16], strides = [1, 1, 1]} : vector<2x16x16xf32> to vector<2x15x16xf32>
    %25 = tpu.concatenate %23, %24 in 1 : vector<2x1x16xf32>, vector<2x15x16xf32> -> vector<2x16x16xf32>
    %cst_11 = arith.constant 0.000000e+00 : f32
    %26 = vector.broadcast %cst_11 : f32 to vector<2x1x16xf32>
    %27 = vector.extract_strided_slice %12 {offsets = [0, 1, 0], sizes = [2, 15, 16], strides = [1, 1, 1]} : vector<2x16x16xf32> to vector<2x15x16xf32>
    %28 = tpu.concatenate %27, %26 in 1 : vector<2x15x16xf32>, vector<2x1x16xf32> -> vector<2x16x16xf32>
    %29 = arith.subf %25, %28 : vector<2x16x16xf32>
    %30 = math.absf %22 : vector<2x16x16xf32>
    %31 = math.absf %29 : vector<2x16x16xf32>
    %32 = arith.addf %30, %31 : vector<2x16x16xf32>
    %33 = arith.subf %1, %32 : vector<2x16x16xf32>
    %34 = arith.mulf %33, %33 : vector<2x16x16xf32>
    %cst_12 = arith.constant 9.99999997E-7 : f32
    %35 = vector.broadcast %cst_12 : f32 to vector<2x16x16xf32>
    %36 = arith.addf %34, %35 : vector<2x16x16xf32>
    %37 = math.sqrt %36 : vector<2x16x16xf32>
    %38 = vector.shape_cast %37 : vector<2x16x16xf32> to vector<1x2x16x16xf32>
    %cst_13 = arith.constant dense<0.000000e+00> : vector<1xf32>
    %39 = vector.multi_reduction <add>, %38, %cst_13 [1, 2, 3] : vector<1x2x16x16xf32> to vector<1xf32>
    %40 = vector.shape_cast %39 : vector<1xf32> to vector<1x1x1x1xf32>
    %41 = vector.extract %40[0, 0, 0, 0] : f32 from vector<1x1x1x1xf32>
    %42 = tpu.iota {dimensions = array<i32: 1>} : vector<1x8x128xi32>
    %43 = tpu.iota {dimensions = array<i32: 2>} : vector<1x8x128xi32>
    %c0_i32 = arith.constant 0 : i32
    %44 = vector.broadcast %c0_i32 : i32 to vector<1x8x128xi32>
    %45 = arith.cmpi eq, %42, %44 : vector<1x8x128xi32>
    %c0_i32_14 = arith.constant 0 : i32
    %46 = vector.broadcast %c0_i32_14 : i32 to vector<1x8x128xi32>
    %47 = arith.cmpi eq, %43, %46 : vector<1x8x128xi32>
    %48 = arith.andi %45, %47 : vector<1x8x128xi1>
    %cst_15 = arith.constant 0.000000e+00 : f32
    %49 = vector.broadcast %41 : f32 to vector<1x8x128xf32>
    %50 = vector.broadcast %cst_15 : f32 to vector<1x8x128xf32>
    %51 = arith.select %48, %49, %50 : vector<1x8x128xi1>, vector<1x8x128xf32>
    %c0_16 = arith.constant 0 : index
    %c0_17 = arith.constant 0 : index
    %c0_18 = arith.constant 0 : index
    %52 = vector.load %arg3[%c0_16, %c0_17, %c0_18] : memref<1x8x128xf32, #tpu.memory_space<vmem>>, vector<1x8x128xf32>
    tpu.vector_store %arg3[%c0_16, %c0_17, %c0_18], %51 {strides = array<i32>} : memref<1x8x128xf32, #tpu.memory_space<vmem>>, vector<1x8x128xf32>,
    return
  }
  func.func @transform_0(%arg0: i32) -> (i32, i32, i32) {
    %c0_i32 = arith.constant 0 : i32
    %c0_i32_0 = arith.constant 0 : i32
    %c0_i32_1 = arith.constant 0 : i32
    return %arg0, %c0_i32, %c0_i32_0 : i32, i32, i32
  }
  func.func @transform_1(%arg0: i32) -> (i32, i32, i32) {
    %c0_i32 = arith.constant 0 : i32
    %c0_i32_0 = arith.constant 0 : i32
    %c0_i32_1 = arith.constant 0 : i32
    return %arg0, %c0_i32, %c0_i32_0 : i32, i32, i32
  }
  func.func @transform_2(%arg0: i32) -> (i32, i32, i32) {
    %c0_i32 = arith.constant 0 : i32
    %c0_i32_0 = arith.constant 0 : i32
    %c0_i32_1 = arith.constant 0 : i32
    return %arg0, %c0_i32, %c0_i32_0 : i32, i32, i32
  }
}

</mosaic_0001>

<bundles_post_ra>
// kernel: tpu_custom_call.1
= control target key start
LH: loop header
LB: loop body
LE: loop exit
PB: predicated region body
PF: predicated region fallthrough
CT: control target
= control target key end

     0   :  { %7 = vsyncpa [#allocation3], 0  ;;  %s413_s0 = inlined_call_operand.hbm [shape: f32[2,16,16], index: 0, kind: input, shape index: {}]   ;;  %s414_s1 = inlined_call_operand.hbm [shape: f32[2,16,16], index: 1, kind: input, shape index: {}]   ;;  %s415_s2 = inlined_call_operand.hbm [shape: f32[1,8,128], index: 2, kind: output, shape index: {}]  }
   0x1   :  { %8 = vsyncpa [#allocation6], 0 }
   0x2   :  { %9 = vsyncpa [#allocation4], 0  ;;  %s354_s9 = smov [#allocation2]  }
   0x3   :  { %s15_s10 = sshll.u32 %s354_s9, 4  ;;  %s16_s10 = int_to_ptr.vmem [resolvable:$true] %s15_s10 }
   0x4   :  { %s296_s11 = scalar_lea.vmem %s16_s10, 512  ;;  %p301_p1 = scmp.lt.s32.totalorder %s16_s10, %s16_s10 }
   0x5   :  { %p297_p0 = scmp.ne.s32.totalorder %s16_s10, %s296_s11  ;;  %p302_p2 = scmp.lt.s32.totalorder %s296_s11, %s296_s11 }
   0x7   :  { %p303_p3 = por %p302_p2, %p301_p1 }
   0x9   :  { %p304_p4 = pnand %p303_p3, %p297_p0 }
   0xb   :  { %307 = shalt.err (!%p304_p4)
}
   0xc   :  { %s355_s12 = smov 128   ;;  %s356_s13 = smov 8  }
   0xd   :  { %21 = dma.hbm_to_vmem [thread:$0]  %s413_s0, 512, %s16_s10, [#allocation3], %s355_s12, %s355_s12, %s356_s13  }
   0xe   :  { %s357_s16 = smov [#allocation5]  }
   0xf   :  { %s27_s17 = sshll.u32 %s357_s16, 4  ;;  %s28_s17 = int_to_ptr.vmem [resolvable:$true] %s27_s17 }
  0x10   :  { %s316_s18 = scalar_lea.vmem %s28_s17, 512  ;;  %p321_p6 = scmp.lt.s32.totalorder %s28_s17, %s28_s17 }
  0x11   :  { %p317_p5 = scmp.ne.s32.totalorder %s28_s17, %s316_s18  ;;  %p322_p7 = scmp.lt.s32.totalorder %s316_s18, %s316_s18 }
  0x13   :  { %p323_p8 = por %p322_p7, %p321_p6 }
  0x15   :  { %p324_p9 = pnand %p323_p8, %p317_p5 }
  0x17   :  { %327 = shalt.err (!%p324_p9)
}
  0x18   :  { %33 = dma.hbm_to_vmem [thread:$0]  %s414_s1, 512, %s28_s17, [#allocation6], %s355_s12, %s355_s12, %s356_s13  }
  0x19   :  { %348 = dma.done.wait [#allocation3], 512  }
  0x1a   :  { %349 = vsyncadd [#allocation3], 4294966784 }
  0x1b   :  { %350 = dma.done.wait [#allocation6], 512  }
  0x1c   :  { %351 = vsyncadd [#allocation6], 4294966784  ;;  %v40_v0 = vld [vmem:[#allocation5] sm:$0xff]  ;;  %s358_s0 = smov 127   ;;  %s359_s21 = smov 1   ;;  %v41_v1 = vld [vmem:[#allocation5 + $0x8] sm:$0xff] }
  0x1d   :  { %69 = vrot.lane.b32.xlu1 %v40_v0, %s358_s0  ;;  %52 = vrot.lane.b32.xlu0 %v40_v0, %s359_s21  ;;  %v43_v2 = vld [vmem:[#allocation5 + $0x18] sm:$0xff]  ;;  %v42_v3 = vld [vmem:[#allocation5 + $0x10] sm:$0xff]  ;;  %vm81_vm0 = vcmask 121856   ;;  %vm64_vm1 = vcmask 7168   ;;  %v90_v4 = vmul.f32 2.0, %v40_v0  ;;  %vm106_vm2 = vcmask 1040384  }
  0x1e   :  { %v91_v11 = vmul.f32 2.0, %v41_v1  ;;  %v93_v21 = vmul.f32 2.0, %v43_v2  ;;  %vm127_vm3 = vcmask 1046528   ;;  %v92_v24 = vmul.f32 2.0, %v42_v3  ;;  %v44_v0 = vld [vmem:[#allocation2] sm:$0xff]  ;;  %s360_s1 = smov [#allocation7]  }
  0x1f   :  { %vm228_vm5 = vcmask 130048   ;;  %s261_s22 = sshll.u32 %s360_s1, 4  ;;  %s262_s22 = int_to_ptr.vmem [resolvable:$true] %s261_s22 }
  0x20   :  { %s328_s24 = scalar_lea.vmem %s262_s22, 128  ;;  %p333_p11 = scmp.lt.s32.totalorder %s262_s22, %s262_s22 }
  0x21   :  { %71 = vrot.lane.b32.xlu1 %v41_v1, %s358_s0  ;;  %54 = vrot.lane.b32.xlu0 %v41_v1, %s359_s21  ;;  %v45_v1 = vld [vmem:[#allocation2 + $0x8] sm:$0xff]  ;;  %p329_p10 = scmp.ne.s32.totalorder %s262_s22, %s328_s24  ;;  %p334_p12 = scmp.lt.s32.totalorder %s328_s24, %s328_s24 }
  0x23   :  { %p335_p13 = por %p334_p12, %p333_p11 }
  0x25   :  { %58 = vrot.lane.b32.xlu1 %v43_v2, %s359_s21  ;;  %56 = vrot.lane.b32.xlu0 %v42_v3, %s359_s21  ;;  %p336_p0 = pnand %p335_p13, %p329_p10 }
  0x29   :  { %75 = vrot.lane.b32.xlu1 %v43_v2, %s358_s0  ;;  %73 = vrot.lane.b32.xlu0 %v42_v3, %s358_s0 }
  0x8f   :  { %v70_v5 = vpop.permute.xlu1 %69  ;;  %v53_v6 = vpop.permute.xlu0 %52 }
  0x90   :  { %v82_v7 = vsel %vm81_vm0, %v70_v5, 0.0  ;;  %v65_v8 = vsel %vm64_vm1, 0.0, %v53_v6 }
  0x91   :  { %v86_v9 = vsub.f32 %v65_v8, %v82_v7  ;;  %v94_v10 = vadd.f32 %v90_v4, %v65_v8 }
  0x93   :  { %v98_v12 = vadd.f32 %v94_v10, %v82_v7  ;;  %v107_v13 = vrot.slane %v86_v9, 7  ;;  %v72_v14 = vpop.permute.xlu1 %71  ;;  %v55_v15 = vpop.permute.xlu0 %54  ;;  %v119_v16 = vmul.f32 2.0, %v86_v9  ;;  %v128_v22 = vrot.slane %v86_v9, 1 }
  0x94   :  { %v83_v17 = vsel %vm81_vm0, %v72_v14, 0.0  ;;  %v66_v18 = vsel %vm64_vm1, 0.0, %v55_v15 }
  0x95   :  { %v117_v19 = vsel %vm106_vm2, 0.0, %v107_v13  ;;  %v87_v20 = vsub.f32 %v66_v18, %v83_v17  ;;  %v95_v23 = vadd.f32 %v91_v11, %v66_v18  ;;  %v148_v25 = vrot.slane %v98_v12, 7 }
  0x96   :  { %v123_v31 = vadd.f32 %v119_v16, %v117_v19  ;;  %v160_v35 = vrot.slane %v98_v12, 1 }
  0x97   :  { %v108_v26 = vrot.slane %v87_v20, 7  ;;  %v120_v27 = vmul.f32 2.0, %v87_v20  ;;  %v129_v28 = vrot.slane %v87_v20, 1  ;;  %v59_v29 = vpop.permute.xlu1 %58  ;;  %v57_v30 = vpop.permute.xlu0 %56  ;;  %v99_v32 = vadd.f32 %v95_v23, %v83_v17 }
  0x98   :  { %v68_v33 = vsel %vm64_vm1, 0.0, %v59_v29  ;;  %v67_v34 = vsel %vm64_vm1, 0.0, %v57_v30  ;;  %v158_v43 = vsel %vm106_vm2, 0.0, %v148_v25 }
  0x99   :  { %v109_v36 = vsel %vm106_vm2, %v107_v13, %v108_v26  ;;  %v130_v37 = vsel %vm127_vm3, %v128_v22, %v129_v28  ;;  %v97_v38 = vadd.f32 %v93_v21, %v68_v33  ;;  %v149_v41 = vrot.slane %v99_v32, 7 }
  0x9a   :  { %v124_v39 = vadd.f32 %v120_v27, %v109_v36  ;;  %v140_v40 = vadd.f32 %v130_v37, %v123_v31  ;;  %v161_v42 = vrot.slane %v99_v32, 1  ;;  %v138_v44 = vsel %vm127_vm3, %v129_v28, 0.0 }
  0x9b   :  { %v96_v45 = vadd.f32 %v92_v24, %v67_v34  ;;  %v76_v46 = vpop.permute.xlu1 %75  ;;  %v74_v47 = vpop.permute.xlu0 %73  ;;  %v150_v49 = vsel %vm106_vm2, %v148_v25, %v149_v41 }
  0x9c   :  { %v141_v48 = vadd.f32 %v138_v44, %v124_v39  ;;  %v162_v50 = vsel %vm127_vm3, %v160_v35, %v161_v42  ;;  %v170_v51 = vsel %vm127_vm3, %v161_v42, 0.0  ;;  %v176_v54 = vand.u32 2147483647, %v140_v40  ;;  %v47_v35 = vld [vmem:[#allocation2 + $0x18] sm:$0xff]  ;;  %v46_v40 = vld [vmem:[#allocation2 + $0x10] sm:$0xff] }
  0x9d   :  { %v172_v52 = vsub.f32 %v158_v43, %v162_v50  ;;  %v173_v53 = vsub.f32 %v150_v49, %v170_v51  ;;  %v85_v55 = vsel %vm81_vm0, %v76_v46, 0.0  ;;  %v84_v59 = vsel %vm81_vm0, %v74_v47, 0.0 }
  0x9e   :  { %v177_v56 = vand.u32 2147483647, %v141_v48  ;;  %v89_v57 = vsub.f32 %v68_v33, %v85_v55  ;;  %v101_v58 = vadd.f32 %v97_v38, %v85_v55  ;;  %v88_v62 = vsub.f32 %v67_v34, %v84_v59 }
  0x9f   :  { %v180_v60 = vand.u32 2147483647, %v172_v52  ;;  %v181_v61 = vand.u32 2147483647, %v173_v53  ;;  %v100_v63 = vadd.f32 %v96_v45, %v84_v59 }
  0xa0   :  { %v111_v2 = vrot.slane %v89_v57, 7  ;;  %v122_v3 = vmul.f32 2.0, %v89_v57  ;;  %v132_v4 = vrot.slane %v89_v57, 1  ;;  %v152_v5 = vrot.slane %v101_v58, 7 }
  0xa1   :  { %v184_v6 = vadd.f32 %v180_v60, %v176_v54  ;;  %v185_v7 = vadd.f32 %v181_v61, %v177_v56  ;;  %v164_v8 = vrot.slane %v101_v58, 1  ;;  %v110_v9 = vrot.slane %v88_v62, 7 }
  0xa2   :  { %v121_v10 = vmul.f32 2.0, %v88_v62  ;;  %v131_v11 = vrot.slane %v88_v62, 1  ;;  %v151_v12 = vrot.slane %v100_v63, 7  ;;  %v139_v17 = vsel %vm127_vm3, %v132_v4, 0.0 }
  0xa3   :  { %v188_v13 = vsub.f32 %v44_v0, %v184_v6  ;;  %v189_v14 = vsub.f32 %v45_v1, %v185_v7  ;;  %v171_v15 = vsel %vm127_vm3, %v164_v8, 0.0  ;;  %v112_v16 = vsel %vm106_vm2, %v110_v9, %v111_v2 }
  0xa4   :  { %v118_v18 = vsel %vm106_vm2, 0.0, %v110_v9  ;;  %v126_v19 = vadd.f32 %v122_v3, %v112_v16  ;;  %v153_v20 = vsel %vm106_vm2, %v151_v12, %v152_v5  ;;  %v133_v24 = vsel %vm127_vm3, %v131_v11, %v132_v4 }
  0xa5   :  { %v192_v21 = vmul.f32 %v188_v13, %v188_v13  ;;  %v193_v22 = vmul.f32 %v189_v14, %v189_v14  ;;  %v125_v23 = vadd.f32 %v121_v10, %v118_v18  ;;  %v159_v26 = vsel %vm106_vm2, 0.0, %v151_v12 }
  0xa6   :  { %v143_v25 = vadd.f32 %v139_v17, %v126_v19  ;;  %v163_v27 = vrot.slane %v100_v63, 1  ;;  %v175_v28 = vsub.f32 %v153_v20, %v171_v15  ;;  %v245_v18 = vlaneseq }
  0xa7   :  { %v196_v29 = vadd.f32 1e-06, %v192_v21  ;;  %v197_v30 = vadd.f32 1e-06, %v193_v22  ;;  %v142_v31 = vadd.f32 %v133_v24, %v125_v23 }
  0xa8   :  { %v165_v32 = vsel %vm127_vm3, %v163_v27, %v164_v8  ;;  %v179_v33 = vand.u32 2147483647, %v143_v25  ;;  %v183_v34 = vand.u32 2147483647, %v175_v28  ;;  %v246_v19 = vshrl.u32 %v245_v18, 7 }
  0xa9   :  { %v174_v36 = vsub.f32 %v159_v26, %v165_v32  ;;  %v178_v37 = vand.u32 2147483647, %v142_v31  ;;  %280 = vrsqrt.f32 %v196_v29  ;;  %vm202_vm4 = vcmp.eq.f32.partialorder %v196_v29, inf }
  0xaa   :  { %v187_v38 = vadd.f32 %v183_v34, %v179_v33  ;;  %282 = vrsqrt.f32 %v197_v30  ;;  %v205_v51 = vand.u32 2147483648, %v196_v29  ;;  %vm204_vm6 = vcmp.eq.f32.partialorder %v196_v29, 0.0 }
  0xab   :  { %v182_v39 = vand.u32 2147483647, %v174_v36  ;;  %vm209_vm7 = vcmp.eq.f32.partialorder %v197_v30, inf  ;;  %v212_v54 = vand.u32 2147483648, %v197_v30  ;;  %vm211_vm8 = vcmp.eq.f32.partialorder %v197_v30, 0.0 }
  0xac   :  { %v191_v41 = vsub.f32 %v47_v35, %v187_v38  ;;  %v248_v20 = vand.u32 127, %v245_v18  ;;  %vm249_vm13 = vcmp.eq.s32.totalorder %v246_v19, 0 }
  0xad   :  { %v186_v42 = vadd.f32 %v182_v39, %v178_v37 }
  0xae   :  { %v195_v43 = vmul.f32 %v191_v41, %v191_v41  ;;  %vm250_vm14 = vcmp.eq.s32.totalorder %v248_v20, 0 }
  0xaf   :  { %v190_v44 = vsub.f32 %v46_v40, %v186_v42  ;;  %vm251_vm15 = vmand %vm249_vm13, %vm250_vm14 }
  0xb0   :  { %v199_v45 = vadd.f32 1e-06, %v195_v43 }
  0xb1   :  { %v194_v46 = vmul.f32 %v190_v44, %v190_v44 }
  0xb2   :  { %284 = vrsqrt.f32 %v199_v45  ;;  %vm223_vm9 = vcmp.eq.f32.partialorder %v199_v45, inf  ;;  %v226_v3 = vand.u32 2147483648, %v199_v45  ;;  %vm225_vm12 = vcmp.eq.f32.partialorder %v199_v45, 0.0 }
  0xb3   :  { %v198_v47 = vadd.f32 1e-06, %v194_v46 }
  0xb5   :  { %286 = vrsqrt.f32 %v198_v47  ;;  %vm216_vm10 = vcmp.eq.f32.partialorder %v198_v47, inf  ;;  %v219_v2 = vand.u32 2147483648, %v198_v47  ;;  %vm218_vm11 = vcmp.eq.f32.partialorder %v198_v47, 0.0 }
  0xb6   :  { %v281_v48 = vpop.eup %280 }
  0xb7   :  { %v283_v49 = vpop.eup %282  ;;  %v201_v50 = vmul.f32 %v281_v48, %v196_v29 }
  0xb8   :  { %v208_v52 = vmul.f32 %v283_v49, %v197_v30 }
  0xb9   :  { %v203_v53 = vsel %vm202_vm4, %v196_v29, %v201_v50 }
  0xba   :  { %v206_v55 = vsel %vm204_vm6, %v205_v51, %v203_v53  ;;  %v210_v56 = vsel %vm209_vm7, %v197_v30, %v208_v52 }
  0xbb   :  { %v213_v57 = vsel %vm211_vm8, %v212_v54, %v210_v56  ;;  %v229_v58 = vsel %vm228_vm5, %v206_v55, 0.0 }
  0xbc   :  { %v230_v59 = vsel %vm228_vm5, %v213_v57, 0.0 }
  0xbd   :  { %v231_v60 = vadd.f32 %v230_v59, %v229_v58 }
  0xbf   :  { %v285_v61 = vpop.eup %284 }
  0xc0   :  { %v222_v62 = vmul.f32 %v285_v61, %v199_v45 }
  0xc2   :  { %v287_v63 = vpop.eup %286  ;;  %v224_v1 = vsel %vm223_vm9, %v199_v45, %v222_v62 }
  0xc3   :  { %v215_v0 = vmul.f32 %v287_v63, %v198_v47  ;;  %v227_v6 = vsel %vm225_vm12, %v226_v3, %v224_v1 }
  0xc4   :  { %v234_v9 = vsel %vm228_vm5, %v227_v6, 0.0 }
  0xc5   :  { %v217_v4 = vsel %vm216_vm10, %v198_v47, %v215_v0 }
  0xc6   :  { %v220_v5 = vsel %vm218_vm11, %v219_v2, %v217_v4 }
  0xc7   :  { %v232_v7 = vsel %vm228_vm5, %v220_v5, 0.0 }
  0xc8   :  { %v233_v8 = vadd.f32 %v232_v7, %v231_v60 }
  0xca   :  { %v235_v10 = vadd.f32 %v234_v9, %v233_v8 }
  0xcc   :  { %236 = vadd.xlane.f32.xlu0 %v235_v10 }
 0x155   :  { %v237_v11 = vpop.xlane.xlu0 %236 }
 0x156   :  { %v238_v12 = vrot.slane %v237_v11, 4 }
 0x158   :  { %v239_v13 = vadd.f32 %v238_v12, %v237_v11 }
 0x15a   :  { %v240_v14 = vrot.slane %v239_v13, 2 }
 0x15c   :  { %v241_v15 = vadd.f32 %v240_v14, %v239_v13 }
 0x15e   :  { %v242_v16 = vrot.slane %v241_v15, 1 }
 0x160   :  { %v243_v17 = vadd.f32 %v242_v16, %v241_v15 }
 0x162   :  { %271 = vpush %v243_v17 }
 0x193   :  { %s272_s23 = spop %271 }
 0x194   :  { %v252_v21 = vstv %s272_s23 }
 0x195   :  { %v253_v22 = vsel %vm251_vm15, %v252_v21, 0.0 }
 0x196   :  { %254 = vst [vmem:[#allocation7] sm:$0xff] %v253_v22 }
 0x197   :  { %339 = shalt.err (!%p336_p0)
}
 0x198   :  { %264 = dma.vmem_to_hbm [thread:$0]  %s262_s22, 128, %s415_s2, [#allocation4]  }
 0x199   :  { %352 = dma.done.wait [#allocation4], 128  }
 0x19a   :  { %353 = vsyncadd [#allocation4], 4294967168 }
 0x19b   :  { %268 = vsyncpa [#allocation3], 1 }
 0x19c   :  { %269 = vsyncpa [#allocation6], 1 }
 0x19d   :  { %270 = vsyncpa [#allocation4], 1 }

</bundles_post_ra>
